<compile_context>
chip_gen: v7x
topology: tpu7x:2x2x1
jax: 0.10.0
libtpu: 0.0.40
codegen_flags: <defaults>
</compile_context>

<pallas_src>
import math

import jax
import jax.numpy as jnp
from jax import lax
from jax.experimental import pallas as pl
from jax.experimental.pallas import tpu as pltpu


_VMEM_BLOCK_BUDGET = 20 * 1024 * 1024   # conservative: fits v7x 64 MiB physical
_VMEM_LIMIT_BYTES = 48 << 20


def _ceil_to(a, m):
    return -(-a // m) * m


def _token_embed_kernel(x_ref, w_ref, b_ref, o_ref):
    # x_ref: (TB, L, C)   TB batch elements, full L (no halo needed)
    # w_ref: (3*C, TD)    fused tap-stacked weights, one d_model tile
    # b_ref: (1, TD)      bias tile (f32)
    # o_ref: (TB, L, TD)
    x = x_ref[...]
    tb, L, C = x.shape

    # Circular neighbours along the sequence axis (k=3, padding=1, circular).
    x_m1 = jnp.concatenate([x[:, L - 1:, :], x[:, :L - 1, :]], axis=1)  # x[(t-1)%L]
    x_p1 = jnp.concatenate([x[:, 1:, :], x[:, :1, :]], axis=1)          # x[(t+1)%L]

    # Single fused MXU matmul over contraction dim 3*C, M dim = TB*L.
    xcat = jnp.concatenate([x_m1, x, x_p1], axis=-1)        # (TB, L, 3C)
    xcat2 = xcat.reshape(tb * L, 3 * C)                      # (TB*L, 3C)
    y = jnp.dot(xcat2, w_ref[...], preferred_element_type=jnp.float32)
    y = y + b_ref[...].astype(jnp.float32)                   # (1, TD) broadcast
    o_ref[...] = y.reshape(tb, L, -1).astype(o_ref.dtype)


def _pick_tiles(B, L, C, D_pad, itemsize, d_tile, b_tile):
    """Largest lane-dense (TD) and batch (TB) tiles fitting the VMEM budget."""
    l_pad = _ceil_to(L, 8)
    c_lanes = _ceil_to(C, 128)

    def fits(tb, td):
        x_blk = tb * l_pad * c_lanes * itemsize
        w_blk = _ceil_to(3 * C, 8) * td * itemsize
        o_blk = tb * l_pad * td * itemsize
        b_blk = 8 * td * 4
        tmp = 3 * x_blk + tb * l_pad * td * 4   # xcat + f32 accumulator temporaries
        return 2 * (x_blk + w_blk + o_blk + b_blk) + tmp <= _VMEM_BLOCK_BUDGET

    td_cands = ([d_tile] if d_tile is not None
                else [d for d in range(D_pad, 0, -128) if D_pad % d == 0])
    tb_cands = ([b_tile] if b_tile is not None
                else [t for t in range(B, 0, -1) if B % t == 0])

    for td in td_cands:
        for tb in tb_cands:
            if fits(tb, td):
                return td, tb
    return td_cands[-1], 1


def token_embedding(x, w_taps, bias, *, d_tile=None, b_tile=None):
    """x: (B, L, C), w_taps: (3, C, D), bias: (D,) -> (B, L, D)."""
    B, L, C = x.shape
    D = w_taps.shape[-1]
    itemsize = jnp.dtype(x.dtype).itemsize

    # Rows [0:C) = tap 0 (multiplies x[t-1]), [C:2C) = tap 1, [2C:3C) = tap 2.
    w_cat = w_taps.reshape(3 * C, D).astype(x.dtype)
    bias2d = bias.reshape(1, D).astype(jnp.float32)

    # Pad d_model up to a multiple of 128 so stores are unmasked / lane-dense;
    # slice the padding off outside the kernel.
    D_pad = _ceil_to(D, 128)
    if D_pad != D:
        w_cat = jnp.pad(w_cat, ((0, 0), (0, D_pad - D)))
        bias2d = jnp.pad(bias2d, ((0, 0), (0, D_pad - D)))

    td, tb = _pick_tiles(B, L, C, D_pad, itemsize, d_tile, b_tile)
    assert D_pad % td == 0 and B % tb == 0
    grid = (B // tb, D_pad // td)

    cost = pl.CostEstimate(
        flops=2 * B * L * (3 * C) * D_pad,
        bytes_accessed=itemsize * (B * L * C + 3 * C * D_pad + B * L * D_pad)
        + 4 * D_pad,
        transcendentals=0,
    )

    out = pl.pallas_call(
        _token_embed_kernel,
        out_shape=jax.ShapeDtypeStruct((B, L, D_pad), x.dtype),
        grid_spec=pltpu.PrefetchScalarGridSpec(
            num_scalar_prefetch=0,
            grid=grid,
            in_specs=[
                pl.BlockSpec((tb, L, C), lambda b, j: (b, 0, 0)),
                pl.BlockSpec((3 * C, td), lambda b, j: (0, j)),
                pl.BlockSpec((1, td), lambda b, j: (0, j)),
            ],
            out_specs=pl.BlockSpec((tb, L, td), lambda b, j: (b, 0, j)),
        ),
        compiler_params=pltpu.CompilerParams(
            dimension_semantics=("parallel", "parallel"),
            vmem_limit_bytes=_VMEM_LIMIT_BYTES,
        ),
        cost_estimate=cost,
    )(x, w_cat, bias2d)

    return out[:, :, :D] if D_pad != D else out


def _reference(x, w_oik, bias):
    """Independent reference: circular-pad + VALID conv in NCL layout."""
    x_ncl = jnp.transpose(x, (0, 2, 1))                                # (B, C, L)
    x_pad = jnp.concatenate([x_ncl[..., -1:], x_ncl, x_ncl[..., :1]], axis=-1)
    y = lax.conv_general_dilated(
        x_pad, w_oik, window_strides=(1,), padding="VALID",
        dimension_numbers=("NCH", "OIH", "NCH"))
    y = y + bias[None, :, None]
    return jnp.transpose(y, (0, 2, 1))                                 # (B, L, D)


def _make_params(key, c_in, d_model):
    kw, kb = jax.random.split(key)
    # kaiming_normal_(fan_in, leaky_relu): std = sqrt(2/(1+0.01^2)) / sqrt(C*3)
    fan_in = c_in * 3
    gain = math.sqrt(2.0 / (1.0 + 0.01 ** 2))
    w_std = gain / math.sqrt(fan_in)
    w_oik = w_std * jax.random.normal(kw, (d_model, c_in, 3), dtype=jnp.float32)
    # Conv1d default bias init: U(-1/sqrt(fan_in), 1/sqrt(fan_in))
    bound = 1.0 / math.sqrt(fan_in)
    bias = jax.random.uniform(kb, (d_model,), minval=-bound, maxval=bound,
                              dtype=jnp.float32)
    # Kernel-side layout: (3, C, D) with w_taps[k, c, o] = w_oik[o, c, k]
    w_taps = jnp.transpose(w_oik, (2, 1, 0))
    return w_oik, w_taps, bias


if __name__ == "__main__":
    key = jax.random.PRNGKey(0)

    # --- Test 1: module-sized shapes (B=2, L=8, c_in=4, d_model=32) ---------
    # Exercises the D-padding path (32 -> 128) with lane-dense stores.
    B, L, C_IN, D_MODEL = 2, 8, 4, 32
    kx, kp = jax.random.split(key)
    x = jax.random.normal(kx, (B, L, C_IN), dtype=jnp.float32)
    w_oik, w_taps, bias = _make_params(kp, C_IN, D_MODEL)

    out = jax.block_until_ready(token_embedding(x, w_taps, bias))
    ref = jax.block_until_ready(_reference(x, w_oik, bias))
    assert out.shape == (B, L, D_MODEL)
    assert jnp.allclose(out, ref, atol=1e-5, rtol=1e-5), "mismatch (test 1)"

    # --- Test 2: exercise batch + d_model tiling (TB=2, TD=128, grid 2x2) ---
    B2, L2, C2, D2 = 4, 16, 4, 256
    kx2, kp2 = jax.random.split(jax.random.PRNGKey(1))
    x2 = jax.random.normal(kx2, (B2, L2, C2), dtype=jnp.float32)
    w_oik2, w_taps2, bias2 = _make_params(kp2, C2, D2)

    out2 = jax.block_until_ready(
        token_embedding(x2, w_taps2, bias2, d_tile=128, b_tile=2))
    ref2 = jax.block_until_ready(_reference(x2, w_oik2, bias2))
    assert out2.shape == (B2, L2, D2)
    assert jnp.allclose(out2, ref2, atol=1e-5, rtol=1e-5), "mismatch (test 2)"

    print("KERNEL_OK")
</pallas_src>

<mosaic_0001>
module attributes {stable_mosaic.version = 11 : i64} {
  func.func @_token_embed_kernel(%arg0: i32, %arg1: i32, %arg2: memref<2x8x4xf32, #tpu.memory_space<vmem>>, %arg3: memref<12x128xf32, #tpu.memory_space<vmem>>, %arg4: memref<1x128xf32, #tpu.memory_space<vmem>>, %arg5: memref<2x8x128xf32, #tpu.memory_space<vmem>>) attributes {dimension_semantics = [#tpu.dimension_semantics<parallel>, #tpu.dimension_semantics<parallel>], iteration_bounds = array<i64: 1, 1>, scalar_prefetch = 0 : i64, scratch_operands = 0 : i64, tpu.core_type = #tpu.core_type<tc>, window_params = [{transform_indices = @transform_0, window_bounds = array<i64: 2, 8, 4>}, {transform_indices = @transform_1, window_bounds = array<i64: 12, 128>}, {transform_indices = @transform_2, window_bounds = array<i64: 1, 128>}, {transform_indices = @transform_3, window_bounds = array<i64: 2, 8, 128>}]} {
    %c0 = arith.constant 0 : index
    %c0_0 = arith.constant 0 : index
    %c0_1 = arith.constant 0 : index
    %0 = vector.load %arg2[%c0, %c0_0, %c0_1] : memref<2x8x4xf32, #tpu.memory_space<vmem>>, vector<2x8x4xf32>
    %1 = vector.extract_strided_slice %0 {offsets = [0, 7, 0], sizes = [2, 1, 4], strides = [1, 1, 1]} : vector<2x8x4xf32> to vector<2x1x4xf32>
    %2 = vector.extract_strided_slice %0 {offsets = [0, 0, 0], sizes = [2, 7, 4], strides = [1, 1, 1]} : vector<2x8x4xf32> to vector<2x7x4xf32>
    %3 = tpu.concatenate %1, %2 in 1 : vector<2x1x4xf32>, vector<2x7x4xf32> -> vector<2x8x4xf32>
    %4 = vector.extract_strided_slice %0 {offsets = [0, 1, 0], sizes = [2, 7, 4], strides = [1, 1, 1]} : vector<2x8x4xf32> to vector<2x7x4xf32>
    %5 = vector.extract_strided_slice %0 {offsets = [0, 0, 0], sizes = [2, 1, 4], strides = [1, 1, 1]} : vector<2x8x4xf32> to vector<2x1x4xf32>
    %6 = tpu.concatenate %4, %5 in 1 : vector<2x7x4xf32>, vector<2x1x4xf32> -> vector<2x8x4xf32>
    %7 = tpu.concatenate %3, %0, %6 in 2 : vector<2x8x4xf32>, vector<2x8x4xf32>, vector<2x8x4xf32> -> vector<2x8x12xf32>
    %8 = vector.shape_cast %7 : vector<2x8x12xf32> to vector<16x12xf32>
    %c0_2 = arith.constant 0 : index
    %c0_3 = arith.constant 0 : index
    %9 = vector.load %arg3[%c0_2, %c0_3] : memref<12x128xf32, #tpu.memory_space<vmem>>, vector<12x128xf32>
    %cst = arith.constant dense<0.000000e+00> : vector<16x128xf32>
    %10 = tpu.matmul %8, %9, %cst {dimension_numbers = #tpu.dot_dimension_numbers<[1], [0], [0], [1], [0, 0, 1, 1], [], []>} : vector<16x12xf32>, vector<12x128xf32>, vector<16x128xf32> -> vector<16x128xf32>
    %c0_4 = arith.constant 0 : index
    %c0_5 = arith.constant 0 : index
    %11 = vector.load %arg4[%c0_4, %c0_5] : memref<1x128xf32, #tpu.memory_space<vmem>>, vector<1x128xf32>
    %12 = vector.broadcast %11 : vector<1x128xf32> to vector<16x128xf32>
    %13 = arith.addf %10, %12 : vector<16x128xf32>
    %14 = vector.shape_cast %13 : vector<16x128xf32> to vector<2x8x128xf32>
    %c0_6 = arith.constant 0 : index
    %c0_7 = arith.constant 0 : index
    %c0_8 = arith.constant 0 : index
    %15 = vector.load %arg5[%c0_6, %c0_7, %c0_8] : memref<2x8x128xf32, #tpu.memory_space<vmem>>, vector<2x8x128xf32>
    tpu.vector_store %arg5[%c0_6, %c0_7, %c0_8], %14 {strides = array<i32>} : memref<2x8x128xf32, #tpu.memory_space<vmem>>, vector<2x8x128xf32>,
    return
  }
  func.func @transform_0(%arg0: i32, %arg1: i32) -> (i32, i32, i32) {
    %c0_i32 = arith.constant 0 : i32
    %c0_i32_0 = arith.constant 0 : i32
    %c0_i32_1 = arith.constant 0 : i32
    return %arg0, %c0_i32, %c0_i32_0 : i32, i32, i32
  }
  func.func @transform_1(%arg0: i32, %arg1: i32) -> (i32, i32) {
    %c0_i32 = arith.constant 0 : i32
    %c0_i32_0 = arith.constant 0 : i32
    return %c0_i32, %arg1 : i32, i32
  }
  func.func @transform_2(%arg0: i32, %arg1: i32) -> (i32, i32) {
    %c0_i32 = arith.constant 0 : i32
    %c0_i32_0 = arith.constant 0 : i32
    return %c0_i32, %arg1 : i32, i32
  }
  func.func @transform_3(%arg0: i32, %arg1: i32) -> (i32, i32, i32) {
    %c0_i32 = arith.constant 0 : i32
    %c0_i32_0 = arith.constant 0 : i32
    return %arg0, %c0_i32, %arg1 : i32, i32, i32
  }
}

</mosaic_0001>

<bundles_post_ra>
// kernel: tpu_custom_call.1
= control target key start
LH: loop header
LB: loop body
LE: loop exit
PB: predicated region body
PF: predicated region fallthrough
CT: control target
= control target key end

     0   :  { %s216_s18 = smov 4   ;;  %vm69_vm0 = vcmask 1043456   ;;  %s271_s0 = inlined_call_operand.vmem [shape: f32[2,8,4], index: 0, kind: input, shape index: {}]   ;;  %s272_s1 = inlined_call_operand.vmem [shape: f32[12,128], index: 1, kind: input, shape index: {}]   ;;  %s273_s2 = inlined_call_operand.vmem [shape: f32[1,128], index: 2, kind: input, shape index: {}]   ;;  %s274_s3 = inlined_call_operand.hbm [shape: f32[2,8,128], index: 3, kind: output, shape index: {}]  }
   0x1   :  { %v15_v0 = vld [vmem:[%s271_s0] sm:$0xff]  ;;  %v16_v1 = vld [vmem:[%s271_s0 + $0x8] sm:$0xff] }
   0x2   :  { %v53_v2 = vld [vmem:[%s272_s1] sm:$0xff]  ;;  %33 = vrot.lane.b32.xlu0 %v15_v0, %s216_s18  ;;  %v26_v3 = vrot.slane %v15_v0, 1  ;;  %v54_v4 = vld [vmem:[%s272_s1 + $0x8] sm:$0xf] }
   0x3   :  { %v181_v5 = vpack.c.bf16 %v54_v4, %v53_v2 }
   0x4   :  { %8 = vsyncpa [#allocation3], 0  ;;  %s217_s21 = smov 8   ;;  %v27_v6 = vrot.slane %v16_v1, 1  ;;  %vm218_vm1 = vmmov 1   ;;  %v19_v7 = vrot.slane %v15_v0, 7 }
   0x5   :  { %41 = vrot.lane.b32.xlu1 %v26_v3, %s217_s21  ;;  %vm182_vm2 = vmpackc.low %vm69_vm0, %vm218_vm1  ;;  %vm47_vm3 = vcmask 31744   ;;  %vm50_vm4 = vcmask 64512   ;;  %v20_v9 = vrot.slane %v16_v1, 7  ;;  %vm62_vm5 = vcmask 97280   ;;  %v166_v17 = vld [vmem:[%s273_s2] ss:$0 sm:$0xff] }
   0x6   :  { %183 = vmatprep.subr.msk.bf16.mxu0 %vm182_vm2, %v181_v5  ;;  %35 = vrot.lane.b32.xlu0 %v16_v1, %s216_s18  ;;  %s219_s22 = smov [#allocation2]  }
   0x7   :  { %186 = vmatpush3.bf16.msk.msra.mxu0 %vm182_vm2, %v181_v5  ;;  %s155_s23 = sshll.u32 %s219_s22, 4  ;;  %s156_s23 = int_to_ptr.vmem [resolvable:$true] %s155_s23 }
   0x8   :  { %s192_s24 = scalar_lea.vmem %s156_s23, 256  ;;  %p197_p1 = scmp.lt.s32.totalorder %s156_s23, %s156_s23 }
   0x9   :  { %43 = vrot.lane.b32.xlu1 %v27_v6, %s217_s21  ;;  %p193_p0 = scmp.ne.s32.totalorder %s156_s23, %s192_s24  ;;  %p198_p2 = scmp.lt.s32.totalorder %s192_s24, %s192_s24 }
   0xb   :  { %p199_p3 = por %p198_p2, %p197_p1 }
   0xd   :  { %p200_p4 = pnand %p199_p3, %p193_p0 }
  0x74   :  { %v34_v8 = vpop.permute.xlu0 %33 }
  0x75   :  { %v48_v10 = vsel %vm47_vm3, %v19_v7, %v34_v8 }
  0x77   :  { %v42_v11 = vpop.permute.xlu1 %41 }
  0x78   :  { %v51_v12 = vsel %vm50_vm4, %v48_v10, %v42_v11  ;;  %v36_v13 = vpop.permute.xlu0 %35 }
  0x79   :  { %178 = vmatprep.mubr.msk.f32.mxu0 %vm62_vm5, %v51_v12  ;;  %v49_v14 = vsel %vm47_vm3, %v20_v9, %v36_v13 }
  0x7b   :  { %v44_v15 = vpop.permute.xlu1 %43 }
  0x7c   :  { %v52_v16 = vsel %vm50_vm4, %v49_v14, %v44_v15 }
  0x7d   :  { %179 = vmatmul.mubr.msk.f32.vlgmr.msra.gmra.mrb[0].mxu0 %vm62_vm5, %v52_v16 }
 0x150   :  { %v180_v18 = vpop.f32.mrb[0].mxu0 }
 0x151   :  { %v145_v19 = vadd.f32 %v180_v18, %v166_v17  ;;  %v139_v20 = vpop.f32.mrb[1].mxu0 }
 0x152   :  { %v140_v21 = vadd.f32 %v166_v17, %v139_v20 }
 0x153   :  { %149 = vst [vmem:[#allocation2 + $0x8] sm:$0xff] %v145_v19 }
 0x154   :  { %148 = vst [vmem:[#allocation2] sm:$0xff] %v140_v21 }
 0x155   :  { %203 = shalt.err (!%p200_p4)
}
 0x156   :  { %s204_s2 = scalar_lea.hbm %s274_s3, 256 }
 0x157   :  { %p205_p5 = scmp.ne.s32.totalorder %s274_s3, %s204_s2  ;;  %p208_p6 = scmp.lt.u32.totalorder %s204_s2, %s274_s3 }
 0x159   :  { %p210_p7 = pnand %p208_p6, %p205_p5 }
 0x15b   :  { %213 = shalt.err (!%p210_p7)
}
 0x15c   :  { %s220_s4 = smov 128  }
 0x15d   :  { %161 = dma.vmem_to_hbm [thread:$0]  %s156_s23, 256, %s274_s3, [#allocation3], %s220_s4, %s220_s4, %s217_s21  }
 0x15e   :  { %214 = dma.done.wait [#allocation3], 256  }
 0x15f   :  { %215 = vsyncadd [#allocation3], 4294967040 }
 0x160   :  { %165 = vsyncpa [#allocation3], 1 }

</bundles_post_ra>
